<compile_context>
chip_gen: v7x
topology: tpu7x:2x2x1
jax: 0.10.0
libtpu: 0.0.40
codegen_flags: <defaults>
</compile_context>

<pallas_src>
import functools
import math

import jax
import jax.numpy as jnp
from jax.experimental import pallas as pl
from jax.experimental.pallas import tpu as pltpu


def _round_up(v: int, m: int) -> int:
    return ((v + m - 1) // m) * m


def _pick_tile(extent: int, cap: int, align: int) -> int:
    """Largest tile (multiple of `align`, <= cap) that minimizes padded extent."""
    cap = max(align, min(cap, _round_up(extent, align)))
    best_tile, best_pad = align, _round_up(extent, align)
    t = align
    while t <= cap:
        padded = _round_up(extent, t)
        if padded < best_pad or (padded == best_pad and t > best_tile):
            best_tile, best_pad = t, padded
        t += align
    return best_tile


# ----------------------------------------------------------------------------
# Pallas kernels:  y = x @ W + 1  (f32 accumulation)
# ----------------------------------------------------------------------------
def _matmul_bias_kernel_onepass(x_ref, w_ref, o_ref):
    # Whole K contraction in a single grid step: no accumulator scratch,
    # no init/finalize predication -- the common (small) ALS_TR case.
    o_ref[...] = (
        jnp.dot(x_ref[...], w_ref[...], preferred_element_type=jnp.float32) + 1.0
    ).astype(o_ref.dtype)


def _matmul_bias_kernel_acc(x_ref, w_ref, o_ref, acc_ref):
    # Large-K path: K is the innermost 'arbitrary' grid axis, accumulate in f32.
    @pl.when(pl.program_id(2) == 0)
    def _init():
        acc_ref[...] = jnp.zeros_like(acc_ref)

    acc_ref[...] += jnp.dot(
        x_ref[...], w_ref[...], preferred_element_type=jnp.float32
    )

    @pl.when(pl.program_id(2) == pl.num_programs(2) - 1)
    def _finalize():
        # Bias added on the f32 accumulator (v5e has no bf16 VPU path).
        o_ref[...] = (acc_ref[...] + 1.0).astype(o_ref.dtype)


def tr_regression(x2d, w2d, *, allow_bf16=True):
    """Tiled Pallas matmul-with-bias: (B, K) @ (K, M) + 1 -> (B, M) float32."""
    B, K = x2d.shape
    Kw, M = w2d.shape
    assert K == Kw

    # bf16 operands (f32 accumulator) only once the operands are big enough
    # that MXU/HBM throughput matters; tiny problems stay f32 to preserve the
    # reference tolerance.
    use_bf16 = allow_bf16 and 4 * (B * K + K * M) >= (8 << 20)
    op_dtype = jnp.bfloat16 if use_bf16 else jnp.float32
    itemsize = 2 if use_bf16 else 4
    b_align = 16 if use_bf16 else 8  # bf16 packs 16 rows per sublane group

    # Minimum hardware-aligned padded extents (lane-dense output: Mp % 128 == 0).
    Bp0 = _round_up(B, b_align)
    Kp0 = _round_up(K, 128)
    Mp0 = _round_up(M, 128)

    # Tile selection: minimize padded waste, cap the double-buffered working
    # set so it fits v7x's 64 MiB VMEM (32 MiB scoped default) with headroom.
    tb = _pick_tile(Bp0, 512, b_align)
    tn = _pick_tile(Mp0, 512, 128)

    # Collapse K to a single grid step when the full-K blocks fit a modest
    # double-buffered budget (removes accumulator scratch + pl.when entirely
    # and keeps the whole W strip VMEM-resident for small M).
    onepass_bytes = 2 * (tb * Kp0 + Kp0 * tn) * itemsize + 2 * tb * tn * 4
    if onepass_bytes <= (12 << 20):
        tk = Kp0
    else:
        tk = _pick_tile(Kp0, 4096 if use_bf16 else 2048, 128)

    Bp = _round_up(Bp0, tb)
    Mp = _round_up(Mp0, tn)
    Kp = _round_up(Kp0, tk)
    gb, gn, gk = Bp // tb, Mp // tn, Kp // tk

    # v7x megacore: only 'parallel' axes shard across the two TensorCores.
    # If K is the only multi-step axis, split an output axis into >= 2 blocks.
    if gk > 1 and gb == 1 and gn == 1:
        if Mp0 >= 256:
            tn = _pick_tile(Mp0, max(128, Mp0 // 2), 128)
        elif Bp0 >= 2 * b_align:
            tb = _pick_tile(Bp0, max(b_align, Bp0 // 2), b_align)
        Bp = _round_up(Bp0, tb)
        Mp = _round_up(Mp0, tn)
        gb, gn = Bp // tb, Mp // tn

    # Cast / pad only when actually needed (no extra HBM round trip for
    # operands that are already tile-aligned and in the right dtype).
    xp = x2d if x2d.dtype == op_dtype else x2d.astype(op_dtype)
    wp = w2d if w2d.dtype == op_dtype else w2d.astype(op_dtype)
    if (Bp, Kp) != (B, K):
        xp = jnp.pad(xp, ((0, Bp - B), (0, Kp - K)))
    if (Kp, Mp) != (K, M):
        wp = jnp.pad(wp, ((0, Kp - K), (0, Mp - M)))

    # Working-set-derived VMEM limit (explicit: v5e scoped default is 16 MiB);
    # never above ~48 MiB so it also fits v7x's 64 MiB physical VMEM.
    ws_bytes = 2 * (tb * tk + tk * tn) * itemsize + (2 + (1 if gk > 1 else 0)) * tb * tn * 4
    vmem_limit = int(min(48 << 20, max(32 << 20, 2 * ws_bytes)))

    common = dict(
        out_shape=jax.ShapeDtypeStruct((Bp, Mp), jnp.float32),
        compiler_params=pltpu.CompilerParams(
            dimension_semantics=("parallel", "parallel", "arbitrary"),
            vmem_limit_bytes=vmem_limit,
        ),
        cost_estimate=pl.CostEstimate(
            flops=2 * Bp * Kp * Mp,
            transcendentals=0,
            bytes_accessed=itemsize * (Bp * Kp + Kp * Mp) + 4 * Bp * Mp,
        ),
    )
    in_specs = [
        pl.BlockSpec((tb, tk), lambda i, j, k: (i, k)),
        pl.BlockSpec((tk, tn), lambda i, j, k: (k, j)),
    ]
    out_spec = pl.BlockSpec((tb, tn), lambda i, j, k: (i, j))

    if gk == 1:
        out = pl.pallas_call(
            _matmul_bias_kernel_onepass,
            grid_spec=pltpu.PrefetchScalarGridSpec(
                num_scalar_prefetch=0,
                grid=(gb, gn, gk),
                in_specs=in_specs,
                out_specs=out_spec,
            ),
            **common,
        )(xp, wp)
    else:
        out = pl.pallas_call(
            _matmul_bias_kernel_acc,
            grid_spec=pltpu.PrefetchScalarGridSpec(
                num_scalar_prefetch=0,
                grid=(gb, gn, gk),
                in_specs=in_specs,
                out_specs=out_spec,
                scratch_shapes=[pltpu.VMEM((tb, tn), jnp.float32)],
            ),
            **common,
        )(xp, wp)

    if (Bp, Mp) != (B, M):
        out = out[:B, :M]
    return out


# ----------------------------------------------------------------------------
# Glue: tensor-ring core merge (tiny, plain JAX) + jitted forward
# ----------------------------------------------------------------------------
def merge_tr_cores(nodes):
    """Ring-contraction of N cores into the full weight tensor W.

    Matches torch.einsum('zay,ybx,xcw,wdz->abcd', ...) from ALS_opt.
    """
    N = len(nodes)
    dims = ''.join(chr(ord('a') + i) for i in range(N))
    parts = []
    for i in range(N):
        parts.append(chr(ord('z') - i) + dims[i] + chr(ord('z') - (i + 1) % N))
    eq = ','.join(parts) + '->' + dims
    return jnp.einsum(eq, *nodes)


@functools.partial(jax.jit, static_argnums=(3,))
def _als_tr_forward(nodes, x, index, output_shape):
    nodes = list(nodes)
    N = len(nodes)

    # regulation = sum_{j >= epoch % N} ||node_j||_F^2 (PyTorch loop resets the
    # running sum at j == index).  `index` is a *traced* scalar combined with a
    # mask over per-core norms, so advancing the epoch never recompiles.
    norms = jnp.stack([jnp.sum(jnp.square(n.astype(jnp.float32))) for n in nodes])
    regulation = jnp.sum(jnp.where(jnp.arange(N) >= index, norms, 0.0))

    # Merge TR cores into W (a few-KB einsum, left to XLA), then run the
    # hot-path contraction + bias as the Pallas matmul kernel.
    W = merge_tr_cores(nodes)
    B = x.shape[0]
    K = math.prod(x.shape[1:])
    M = math.prod(output_shape[1:])
    x2d = x.reshape(B, K)
    w2d = W.reshape(K, M)
    y2d = tr_regression(x2d, w2d)
    y_hat = y2d.reshape((B,) + tuple(output_shape[1:]))
    return y_hat, regulation


class ALS_TR_Pallas:
    """JAX/Pallas port of the PyTorch ALS_TR module's forward pass."""

    def __init__(self, input_shape, output_shape, rank, key):
        shape_w = tuple(input_shape[1:]) + tuple(output_shape[1:])
        self.N = len(shape_w)
        self.n = len(output_shape) - 1
        self.input_shape = tuple(input_shape)
        self.output_shape = tuple(output_shape)
        self.rank = rank
        keys = jax.random.split(key, self.N)
        self.nodes = []
        for i in range(self.N):
            cur_r = rank[i % len(rank)]
            nxt_r = rank[(i + 1) % len(rank)]
            shape = (cur_r, shape_w[i], nxt_r)
            # torch.randn equivalent: standard normal, deterministic via key.
            self.nodes.append(
                jax.random.normal(keys[i], shape, dtype=jnp.float32)
            )
        self.epoch = 0

    def forward(self, x):
        epoch = self.epoch
        self.epoch += 1
        index = jnp.int32(epoch % self.N)  # dynamic -> no per-epoch recompile
        return _als_tr_forward(tuple(self.nodes), x, index, self.output_shape)


if __name__ == "__main__":
    # Shapes consistent with the module's forward:
    #   input_shape = (2, 4, 16, 16)  -> x: (B=2, 4, 16, 16)
    #   output_shape = (2, 8)         -> y_hat: (2, 8)
    #   rank = [3, 4]
    input_shape = (2, 4, 16, 16)
    output_shape = (2, 8)
    rank = [3, 4]

    root = jax.random.PRNGKey(0)
    k_params, k_x = jax.random.split(root)

    model = ALS_TR_Pallas(input_shape, output_shape, rank, k_params)
    x = jax.random.normal(k_x, input_shape, dtype=jnp.float32)

    # Epoch 0.
    y_hat, regulation = model.forward(x)
    y_hat = jax.block_until_ready(y_hat)
    regulation = jax.block_until_ready(regulation)

    # Pure-JAX reference check (mirrors torch.einsum('abcd,bcde->ae', x, W)+1).
    W_ref = merge_tr_cores(model.nodes)
    y_ref = jnp.einsum('abcd,bcde->ae', x, W_ref) + 1.0
    reg_ref0 = sum(jnp.sum(n * n) for n in model.nodes)          # epoch 0: all
    assert y_hat.shape == (2, 8)
    assert jnp.allclose(y_hat, y_ref, rtol=1e-3, atol=1e-2), "y_hat mismatch"
    assert jnp.allclose(regulation, reg_ref0, rtol=1e-5, atol=1e-4), "reg mismatch (e0)"

    # Epoch 1 exercises the dynamic-index regularization mask (reuses compile).
    y_hat1, regulation1 = model.forward(x)
    jax.block_until_ready((y_hat1, regulation1))
    reg_ref1 = sum(jnp.sum(n * n) for n in model.nodes[1:])      # epoch 1: j>=1
    assert jnp.allclose(y_hat1, y_ref, rtol=1e-3, atol=1e-2), "y_hat mismatch (e1)"
    assert jnp.allclose(regulation1, reg_ref1, rtol=1e-5, atol=1e-4), "reg mismatch (e1)"

    print("KERNEL_OK")
</pallas_src>

<mosaic_0001>
module attributes {stable_mosaic.version = 11 : i64} {
  func.func @_matmul_bias_kernel_onepass(%arg0: i32, %arg1: i32, %arg2: i32, %arg3: memref<8x1024xf32, #tpu.memory_space<vmem>>, %arg4: memref<1024x128xf32, #tpu.memory_space<vmem>>, %arg5: memref<8x128xf32, #tpu.memory_space<vmem>>) attributes {dimension_semantics = [#tpu.dimension_semantics<parallel>, #tpu.dimension_semantics<parallel>, #tpu.dimension_semantics<arbitrary>], iteration_bounds = array<i64: 1, 1, 1>, scalar_prefetch = 0 : i64, scratch_operands = 0 : i64, tpu.core_type = #tpu.core_type<tc>, window_params = [{transform_indices = @transform_0, window_bounds = array<i64: 8, 1024>}, {transform_indices = @transform_1, window_bounds = array<i64: 1024, 128>}, {transform_indices = @transform_2, window_bounds = array<i64: 8, 128>}]} {
    %c0 = arith.constant 0 : index
    %c0_0 = arith.constant 0 : index
    %0 = vector.load %arg3[%c0, %c0_0] : memref<8x1024xf32, #tpu.memory_space<vmem>>, vector<8x1024xf32>
    %c0_1 = arith.constant 0 : index
    %c0_2 = arith.constant 0 : index
    %1 = vector.load %arg4[%c0_1, %c0_2] : memref<1024x128xf32, #tpu.memory_space<vmem>>, vector<1024x128xf32>
    %cst = arith.constant dense<0.000000e+00> : vector<8x128xf32>
    %2 = tpu.matmul %0, %1, %cst {dimension_numbers = #tpu.dot_dimension_numbers<[1], [0], [0], [1], [0, 0, 1, 1], [], []>} : vector<8x1024xf32>, vector<1024x128xf32>, vector<8x128xf32> -> vector<8x128xf32>
    %cst_3 = arith.constant 1.000000e+00 : f32
    %3 = vector.broadcast %cst_3 : f32 to vector<8x128xf32>
    %4 = arith.addf %2, %3 : vector<8x128xf32>
    %c0_4 = arith.constant 0 : index
    %c0_5 = arith.constant 0 : index
    %5 = vector.load %arg5[%c0_4, %c0_5] : memref<8x128xf32, #tpu.memory_space<vmem>>, vector<8x128xf32>
    tpu.vector_store %arg5[%c0_4, %c0_5], %4 {strides = array<i32>} : memref<8x128xf32, #tpu.memory_space<vmem>>, vector<8x128xf32>,
    return
  }
  func.func @transform_0(%arg0: i32, %arg1: i32, %arg2: i32) -> (i32, i32) {
    %c0_i32 = arith.constant 0 : i32
    return %arg0, %arg2 : i32, i32
  }
  func.func @transform_1(%arg0: i32, %arg1: i32, %arg2: i32) -> (i32, i32) {
    %c0_i32 = arith.constant 0 : i32
    return %arg2, %arg1 : i32, i32
  }
  func.func @transform_2(%arg0: i32, %arg1: i32, %arg2: i32) -> (i32, i32) {
    %c0_i32 = arith.constant 0 : i32
    return %arg0, %arg1 : i32, i32
  }
}

</mosaic_0001>

<bundles_post_ra>
// kernel: _als_tr_forward.1
= control target key start
LH: loop header
LB: loop body
LE: loop exit
PB: predicated region body
PF: predicated region fallthrough
CT: control target
= control target key end

     0   :  { %s1126_s1 = inlined_call_operand.vmem [shape: f32[1024,128], index: 1, kind: input, shape index: {}]   ;;  %s1127_s0 = inlined_call_operand.vmem [shape: f32[8,1024], index: 0, kind: input, shape index: {}]   ;;  %s1128_s2 = inlined_call_operand.vmem [shape: f32[8,128], index: 2, kind: output, shape index: {}]  }
   0x1   :  { %v35_v0 = vld [vmem:[%s1126_s1 + $0x80] sm:$0xff]  ;;  %v36_v1 = vld [vmem:[%s1126_s1 + $0x88] sm:$0xff]  ;;  %v37_v11 = vld [vmem:[%s1126_s1 + $0x90] sm:$0xff] }
   0x2   :  { %v19_v2 = vld [vmem:[%s1126_s1] sm:$0xff]  ;;  %v572_v3 = vpack.c.bf16 %v36_v1, %v35_v0  ;;  %v20_v4 = vld [vmem:[%s1126_s1 + $0x8] sm:$0xff]  ;;  %v38_v13 = vld [vmem:[%s1126_s1 + $0x98] sm:$0xff] }
   0x3   :  { %v67_v5 = vld [vmem:[%s1126_s1 + $0x180] sm:$0xff]  ;;  %v68_v6 = vld [vmem:[%s1126_s1 + $0x188] sm:$0xff]  ;;  %v574_v7 = vpack.c.bf16 %v20_v4, %v19_v2  ;;  %v21_v14 = vld [vmem:[%s1126_s1 + $0x10] sm:$0xff]  ;;  %v576_v16 = vpack.c.bf16 %v38_v13, %v37_v11 }
   0x4   :  { %v604_v8 = vpack.c.bf16 %v68_v6, %v67_v5  ;;  %v51_v9 = vld [vmem:[%s1126_s1 + $0x100] sm:$0xff]  ;;  %v52_v10 = vld [vmem:[%s1126_s1 + $0x108] sm:$0xff]  ;;  %573 = vmatprep.subr.bf16.mxu0 %v572_v3  ;;  %v22_v15 = vld [vmem:[%s1126_s1 + $0x18] sm:$0xff] }
   0x5   :  { %v606_v12 = vpack.c.bf16 %v52_v10, %v51_v9  ;;  %575 = vmatpush3.bf16.msra.mxu0 %v574_v7  ;;  %v578_v17 = vpack.c.bf16 %v22_v15, %v21_v14  ;;  %v69_v18 = vld [vmem:[%s1126_s1 + $0x190] sm:$0xff]  ;;  %v70_v19 = vld [vmem:[%s1126_s1 + $0x198] sm:$0xff]  ;;  %v39_v23 = vld [vmem:[%s1126_s1 + $0xa0] sm:$0xff] }
   0x6   :  { %605 = vmatprep.subr.bf16.mxu1 %v604_v8  ;;  %v53_v20 = vld [vmem:[%s1126_s1 + $0x110] sm:$0xff]  ;;  %v608_v21 = vpack.c.bf16 %v70_v19, %v69_v18  ;;  %v54_v22 = vld [vmem:[%s1126_s1 + $0x118] sm:$0xff]  ;;  %v40_v24 = vld [vmem:[%s1126_s1 + $0xa8] sm:$0xff]  ;;  %577 = vmatprep.subr.bf16.mxu0 %v576_v16 }
   0x7   :  { %607 = vmatpush3.bf16.msra.mxu1 %v606_v12  ;;  %v610_v25 = vpack.c.bf16 %v54_v22, %v53_v20  ;;  %v580_v26 = vpack.c.bf16 %v40_v24, %v39_v23  ;;  %v23_v27 = vld [vmem:[%s1126_s1 + $0x20] sm:$0xff]  ;;  %v24_v28 = vld [vmem:[%s1126_s1 + $0x28] sm:$0xff]  ;;  %v41_v35 = vld [vmem:[%s1126_s1 + $0xb0] sm:$0xff] }
   0x8   :  { %v71_v29 = vld [vmem:[%s1126_s1 + $0x1a0] sm:$0xff]  ;;  %609 = vmatprep.subr.bf16.mxu1 %v608_v21  ;;  %v72_v30 = vld [vmem:[%s1126_s1 + $0x1a8] sm:$0xff]  ;;  %v582_v33 = vpack.c.bf16 %v24_v28, %v23_v27  ;;  %v42_v36 = vld [vmem:[%s1126_s1 + $0xb8] sm:$0xff] }
   0x9   :  { %v55_v31 = vld [vmem:[%s1126_s1 + $0x120] sm:$0xff]  ;;  %v56_v32 = vld [vmem:[%s1126_s1 + $0x128] sm:$0xff]  ;;  %579 = vmatpush3.bf16.msra.mxu0 %v578_v17  ;;  %v612_v34 = vpack.c.bf16 %v72_v30, %v71_v29  ;;  %v25_v37 = vld [vmem:[%s1126_s1 + $0x30] sm:$0xff]  ;;  %v584_v39 = vpack.c.bf16 %v42_v36, %v41_v35 }
   0xa   :  { %581 = vmatprep.subr.bf16.mxu0 %v580_v26  ;;  %v614_v38 = vpack.c.bf16 %v56_v32, %v55_v31  ;;  %v26_v40 = vld [vmem:[%s1126_s1 + $0x38] sm:$0xff]  ;;  %v73_v41 = vld [vmem:[%s1126_s1 + $0x1b0] sm:$0xff]  ;;  %v43_v46 = vld [vmem:[%s1126_s1 + $0xc0] sm:$0xff] }
   0xb   :  { %611 = vmatpush3.bf16.msra.mxu1 %v610_v25  ;;  %v74_v42 = vld [vmem:[%s1126_s1 + $0x1b8] sm:$0xff]  ;;  %v57_v44 = vld [vmem:[%s1126_s1 + $0x130] sm:$0xff]  ;;  %v44_v47 = vld [vmem:[%s1126_s1 + $0xc8] sm:$0xff]  ;;  %v586_v48 = vpack.c.bf16 %v26_v40, %v25_v37 }
   0xc   :  { %613 = vmatprep.subr.bf16.mxu1 %v612_v34  ;;  %v616_v43 = vpack.c.bf16 %v74_v42, %v73_v41  ;;  %v58_v45 = vld [vmem:[%s1126_s1 + $0x138] sm:$0xff]  ;;  %v75_v49 = vld [vmem:[%s1126_s1 + $0x1c0] sm:$0xff]  ;;  %v76_v50 = vld [vmem:[%s1126_s1 + $0x1c8] sm:$0xff]  ;;  %v588_v52 = vpack.c.bf16 %v44_v47, %v43_v46 }
   0xd   :  { %583 = vmatpush3.bf16.msra.mxu0 %v582_v33  ;;  %v618_v51 = vpack.c.bf16 %v58_v45, %v57_v44  ;;  %v27_v53 = vld [vmem:[%s1126_s1 + $0x40] sm:$0xff]  ;;  %v28_v54 = vld [vmem:[%s1126_s1 + $0x48] sm:$0xff]  ;;  %v620_v56 = vpack.c.bf16 %v76_v50, %v75_v49  ;;  %v45_v58 = vld [vmem:[%s1126_s1 + $0xd0] sm:$0xff] }
   0xe   :  { %585 = vmatprep.subr.bf16.mxu0 %v584_v39  ;;  %v59_v55 = vld [vmem:[%s1126_s1 + $0x140] sm:$0xff]  ;;  %v60_v57 = vld [vmem:[%s1126_s1 + $0x148] sm:$0xff]  ;;  %v46_v59 = vld [vmem:[%s1126_s1 + $0xd8] sm:$0xff]  ;;  %v590_v62 = vpack.c.bf16 %v28_v54, %v27_v53 }
   0xf   :  { %615 = vmatpush3.bf16.msra.mxu1 %v614_v38  ;;  %v77_v60 = vld [vmem:[%s1126_s1 + $0x1d0] sm:$0xff]  ;;  %v78_v61 = vld [vmem:[%s1126_s1 + $0x1d8] sm:$0xff]  ;;  %v622_v63 = vpack.c.bf16 %v60_v57, %v59_v55  ;;  %v592_v0 = vpack.c.bf16 %v46_v59, %v45_v58  ;;  %v47_v6 = vld [vmem:[%s1126_s1 + $0xe0] sm:$0xff] }
  0x10   :  { %617 = vmatprep.subr.bf16.mxu1 %v616_v43  ;;  %v29_v1 = vld [vmem:[%s1126_s1 + $0x50] sm:$0xff]  ;;  %v30_v2 = vld [vmem:[%s1126_s1 + $0x58] sm:$0xff]  ;;  %v624_v4 = vpack.c.bf16 %v78_v61, %v77_v60  ;;  %v48_v7 = vld [vmem:[%s1126_s1 + $0xe8] sm:$0xff] }
  0x11   :  { %587 = vmatpush3.bf16.msra.mxu0 %v586_v48  ;;  %v61_v3 = vld [vmem:[%s1126_s1 + $0x150] sm:$0xff]  ;;  %v62_v5 = vld [vmem:[%s1126_s1 + $0x158] sm:$0xff]  ;;  %v79_v8 = vld [vmem:[%s1126_s1 + $0x1e0] sm:$0xff]  ;;  %v594_v10 = vpack.c.bf16 %v30_v2, %v29_v1  ;;  %v596_v14 = vpack.c.bf16 %v48_v7, %v47_v6 }
  0x12   :  { %589 = vmatprep.subr.bf16.mxu0 %v588_v52  ;;  %v80_v9 = vld [vmem:[%s1126_s1 + $0x1e8] sm:$0xff]  ;;  %v31_v11 = vld [vmem:[%s1126_s1 + $0x60] sm:$0xff]  ;;  %v626_v13 = vpack.c.bf16 %v62_v5, %v61_v3  ;;  %v49_v19 = vld [vmem:[%s1126_s1 + $0xf0] sm:$0xff] }
  0x13   :  { %619 = vmatpush3.bf16.msra.mxu1 %v618_v51  ;;  %v32_v12 = vld [vmem:[%s1126_s1 + $0x68] sm:$0xff]  ;;  %v63_v15 = vld [vmem:[%s1126_s1 + $0x160] sm:$0xff]  ;;  %v628_v18 = vpack.c.bf16 %v80_v9, %v79_v8  ;;  %v50_v20 = vld [vmem:[%s1126_s1 + $0xf8] sm:$0xff] }
  0x14   :  { %621 = vmatprep.subr.bf16.mxu1 %v620_v56  ;;  %v64_v16 = vld [vmem:[%s1126_s1 + $0x168] sm:$0xff]  ;;  %v14_v21 = vld [vmem:[%s1127_s0 + $0x18] sm:$0xff]  ;;  %v81_v22 = vld [vmem:[%s1126_s1 + $0x1f0] sm:$0xff]  ;;  %v598_v24 = vpack.c.bf16 %v32_v12, %v31_v11  ;;  %v600_v26 = vpack.c.bf16 %v50_v20, %v49_v19 }
  0x15   :  { %591 = vmatpush3.bf16.msra.mxu0 %v590_v62  ;;  %v12_v17 = vld [vmem:[%s1127_s0 + $0x8] sm:$0xff]  ;;  %v82_v23 = vld [vmem:[%s1126_s1 + $0x1f8] sm:$0xff]  ;;  %281 = vmatprep.mubr.f32.mxu1 %v14_v21  ;;  %v630_v25 = vpack.c.bf16 %v64_v16, %v63_v15  ;;  %v33_v27 = vld [vmem:[%s1126_s1 + $0x70] sm:$0xff] }
  0x16   :  { %593 = vmatprep.subr.bf16.mxu0 %v592_v0  ;;  %211 = vmatprep.mubr.f32.mxu0 %v12_v17  ;;  %v34_v28 = vld [vmem:[%s1126_s1 + $0x78] sm:$0xff]  ;;  %v65_v29 = vld [vmem:[%s1126_s1 + $0x170] sm:$0xff]  ;;  %v632_v30 = vpack.c.bf16 %v82_v23, %v81_v22  ;;  %v99_v32 = vld [vmem:[%s1126_s1 + $0x280] sm:$0xff] }
  0x17   :  { %623 = vmatpush3.bf16.msra.mxu1 %v622_v63  ;;  %v66_v31 = vld [vmem:[%s1126_s1 + $0x178] sm:$0xff]  ;;  %v100_v33 = vld [vmem:[%s1126_s1 + $0x288] sm:$0xff]  ;;  %v131_v34 = vld [vmem:[%s1126_s1 + $0x380] sm:$0xff]  ;;  %v602_v36 = vpack.c.bf16 %v34_v28, %v33_v27 }
  0x18   :  { %625 = vmatprep.subr.bf16.mxu1 %v624_v4  ;;  %v132_v35 = vld [vmem:[%s1126_s1 + $0x388] sm:$0xff]  ;;  %v634_v37 = vpack.c.bf16 %v66_v31, %v65_v29  ;;  %v636_v38 = vpack.c.bf16 %v100_v33, %v99_v32  ;;  %v83_v39 = vld [vmem:[%s1126_s1 + $0x200] sm:$0xff]  ;;  %v101_v44 = vld [vmem:[%s1126_s1 + $0x290] sm:$0xff] }
  0x19   :  { %595 = vmatpush3.bf16.msra.mxu0 %v594_v10  ;;  %v84_v40 = vld [vmem:[%s1126_s1 + $0x208] sm:$0xff]  ;;  %v115_v41 = vld [vmem:[%s1126_s1 + $0x300] sm:$0xff]  ;;  %v668_v42 = vpack.c.bf16 %v132_v35, %v131_v34  ;;  %v102_v45 = vld [vmem:[%s1126_s1 + $0x298] sm:$0xff] }
  0x1a   :  { %597 = vmatprep.subr.bf16.mxu0 %v596_v14  ;;  %v116_v43 = vld [vmem:[%s1126_s1 + $0x308] sm:$0xff]  ;;  %v133_v46 = vld [vmem:[%s1126_s1 + $0x390] sm:$0xff]  ;;  %v134_v47 = vld [vmem:[%s1126_s1 + $0x398] sm:$0xff]  ;;  %v638_v49 = vpack.c.bf16 %v84_v40, %v83_v39  ;;  %v640_v52 = vpack.c.bf16 %v102_v45, %v101_v44 }
  0x1b   :  { %627 = vmatpush3.bf16.msra.mxu1 %v626_v13  ;;  %v11_v48 = vld [vmem:[%s1127_s0] sm:$0xff]  ;;  %v13_v50 = vld [vmem:[%s1127_s0 + $0x10] sm:$0xff]  ;;  %v670_v51 = vpack.c.bf16 %v116_v43, %v115_v41  ;;  %v86_v54 = vld [vmem:[%s1126_s1 + $0x218] sm:$0xff]  ;;  %v672_v56 = vpack.c.bf16 %v134_v47, %v133_v46 }
  0x1c   :  { %629 = vmatprep.subr.bf16.mxu1 %v628_v18  ;;  %v85_v53 = vld [vmem:[%s1126_s1 + $0x210] sm:$0xff]  ;;  %v118_v57 = vld [vmem:[%s1126_s1 + $0x318] sm:$0xff]  ;;  %v103_v58 = vld [vmem:[%s1126_s1 + $0x2a0] sm:$0xff] }
  0x1d   :  { %599 = vmatpush3.bf16.msra.mxu0 %v598_v24  ;;  %v117_v55 = vld [vmem:[%s1126_s1 + $0x310] sm:$0xff]  ;;  %v104_v59 = vld [vmem:[%s1126_s1 + $0x2a8] sm:$0xff]  ;;  %v135_v60 = vld [vmem:[%s1126_s1 + $0x3a0] sm:$0xff]  ;;  %v642_v62 = vpack.c.bf16 %v86_v54, %v85_v53 }
  0x1e   :  { %601 = vmatprep.subr.bf16.mxu0 %v600_v26  ;;  %v136_v61 = vld [vmem:[%s1126_s1 + $0x3a8] sm:$0xff]  ;;  %v674_v63 = vpack.c.bf16 %v118_v57, %v117_v55  ;;  %v644_v0 = vpack.c.bf16 %v104_v59, %v103_v58  ;;  %v87_v1 = vld [vmem:[%s1126_s1 + $0x220] sm:$0xff]  ;;  %v105_v6 = vld [vmem:[%s1126_s1 + $0x2b0] sm:$0xff] }
  0x1f   :  { %631 = vmatpush3.bf16.msra.mxu1 %v630_v25  ;;  %v88_v2 = vld [vmem:[%s1126_s1 + $0x228] sm:$0xff]  ;;  %v119_v3 = vld [vmem:[%s1126_s1 + $0x320] sm:$0xff]  ;;  %v676_v4 = vpack.c.bf16 %v136_v61, %v135_v60  ;;  %v106_v7 = vld [vmem:[%s1126_s1 + $0x2b8] sm:$0xff] }
  0x20   :  { %633 = vmatprep.subr.bf16.mxu1 %v632_v30  ;;  %v120_v5 = vld [vmem:[%s1126_s1 + $0x328] sm:$0xff]  ;;  %v137_v8 = vld [vmem:[%s1126_s1 + $0x3b0] sm:$0xff]  ;;  %v138_v9 = vld [vmem:[%s1126_s1 + $0x3b8] sm:$0xff]  ;;  %v646_v10 = vpack.c.bf16 %v88_v2, %v87_v1  ;;  %v648_v12 = vpack.c.bf16 %v106_v7, %v105_v6 }
  0x21   :  { %603 = vmatpush3.bf16.msra.mxu0 %v602_v36  ;;  %v678_v11 = vpack.c.bf16 %v120_v5, %v119_v3  ;;  %v89_v13 = vld [vmem:[%s1126_s1 + $0x230] sm:$0xff]  ;;  %v90_v14 = vld [vmem:[%s1126_s1 + $0x238] sm:$0xff]  ;;  %v680_v16 = vpack.c.bf16 %v138_v9, %v137_v8  ;;  %v107_v18 = vld [vmem:[%s1126_s1 + $0x2c0] sm:$0xff] }
  0x22   :  { %637 = vmatprep.subr.bf16.mxu0 %v636_v38  ;;  %v121_v15 = vld [vmem:[%s1126_s1 + $0x330] sm:$0xff]  ;;  %v122_v17 = vld [vmem:[%s1126_s1 + $0x338] sm:$0xff]  ;;  %v108_v19 = vld [vmem:[%s1126_s1 + $0x2c8] sm:$0xff]  ;;  %v650_v22 = vpack.c.bf16 %v90_v14, %v89_v13 }
  0x23   :  { %635 = vmatpush3.bf16.msra.mxu1 %v634_v37  ;;  %v139_v20 = vld [vmem:[%s1126_s1 + $0x3c0] sm:$0xff]  ;;  %v140_v21 = vld [vmem:[%s1126_s1 + $0x3c8] sm:$0xff]  ;;  %v18_v24 = vld [vmem:[%s1127_s0 + $0x38] sm:$0xff]  ;;  %v682_v25 = vpack.c.bf16 %v122_v17, %v121_v15  ;;  %v652_v26 = vpack.c.bf16 %v108_v19, %v107_v18 }
  0x24   :  { %669 = vmatprep.subr.bf16.mxu1 %v668_v42  ;;  %212 = vmatmul.mubr.f32.vlgmr.msra.gmra.mrb[0].mxu0 %v11_v48  ;;  %v16_v23 = vld [vmem:[%s1127_s0 + $0x28] sm:$0xff]  ;;  %v91_v27 = vld [vmem:[%s1126_s1 + $0x240] sm:$0xff]  ;;  %v684_v30 = vpack.c.bf16 %v140_v21, %v139_v20  ;;  %v109_v32 = vld [vmem:[%s1126_s1 + $0x2d0] sm:$0xff] }
  0x25   :  { %639 = vmatpush3.bf16.msra.mxu0 %v638_v49  ;;  %v92_v28 = vld [vmem:[%s1126_s1 + $0x248] sm:$0xff]  ;;  %v123_v29 = vld [vmem:[%s1126_s1 + $0x340] sm:$0xff]  ;;  %v110_v33 = vld [vmem:[%s1126_s1 + $0x2d8] sm:$0xff]  ;;  %351 = vmatprep.mubr.f32.mxu0 %v16_v23 }
  0x26   :  { %282 = vmatmul.mubr.f32.vlgmr.msra.gmra.mrb[0].mxu1 %v13_v50  ;;  %641 = vmatprep.subr.bf16.mxu0 %v640_v52  ;;  %v124_v31 = vld [vmem:[%s1126_s1 + $0x348] sm:$0xff]  ;;  %v141_v34 = vld [vmem:[%s1126_s1 + $0x3d0] sm:$0xff]  ;;  %v142_v35 = vld [vmem:[%s1126_s1 + $0x3d8] sm:$0xff]  ;;  %v654_v36 = vpack.c.bf16 %v92_v28, %v91_v27  ;;  %v656_v38 = vpack.c.bf16 %v110_v33, %v109_v32 }
  0x27   :  { %671 = vmatpush3.bf16.msra.mxu1 %v670_v51  ;;  %421 = vmatprep.mubr.f32.mxu1 %v18_v24  ;;  %v686_v37 = vpack.c.bf16 %v124_v31, %v123_v29  ;;  %v93_v39 = vld [vmem:[%s1126_s1 + $0x250] sm:$0xff]  ;;  %v94_v40 = vld [vmem:[%s1126_s1 + $0x258] sm:$0xff]  ;;  %v688_v42 = vpack.c.bf16 %v142_v35, %v141_v34  ;;  %v111_v44 = vld [vmem:[%s1126_s1 + $0x2e0] sm:$0xff] }
  0x28   :  { %673 = vmatprep.subr.bf16.mxu1 %v672_v56  ;;  %v125_v41 = vld [vmem:[%s1126_s1 + $0x350] sm:$0xff]  ;;  %v126_v43 = vld [vmem:[%s1126_s1 + $0x358] sm:$0xff]  ;;  %v112_v45 = vld [vmem:[%s1126_s1 + $0x2e8] sm:$0xff]  ;;  %v658_v48 = vpack.c.bf16 %v94_v40, %v93_v39 }
  0x29   :  { %643 = vmatpush3.bf16.msra.mxu0 %v642_v62  ;;  %v143_v46 = vld [vmem:[%s1126_s1 + $0x3e0] sm:$0xff]  ;;  %v144_v47 = vld [vmem:[%s1126_s1 + $0x3e8] sm:$0xff]  ;;  %v690_v49 = vpack.c.bf16 %v126_v43, %v125_v41  ;;  %v660_v50 = vpack.c.bf16 %v112_v45, %v111_v44  ;;  %v113_v56 = vld [vmem:[%s1126_s1 + $0x2f0] sm:$0xff] }
  0x2a   :  { %645 = vmatprep.subr.bf16.mxu0 %v644_v0  ;;  %v95_v51 = vld [vmem:[%s1126_s1 + $0x260] sm:$0xff]  ;;  %v96_v52 = vld [vmem:[%s1126_s1 + $0x268] sm:$0xff]  ;;  %v692_v54 = vpack.c.bf16 %v144_v47, %v143_v46  ;;  %v114_v57 = vld [vmem:[%s1126_s1 + $0x2f8] sm:$0xff] }
  0x2b   :  { %675 = vmatpush3.bf16.msra.mxu1 %v674_v63  ;;  %v127_v53 = vld [vmem:[%s1126_s1 + $0x360] sm:$0xff]  ;;  %v128_v55 = vld [vmem:[%s1126_s1 + $0x368] sm:$0xff]  ;;  %v145_v58 = vld [vmem:[%s1126_s1 + $0x3f0] sm:$0xff]  ;;  %v662_v60 = vpack.c.bf16 %v96_v52, %v95_v51  ;;  %v664_v62 = vpack.c.bf16 %v114_v57, %v113_v56 }
  0x2c   :  { %677 = vmatprep.subr.bf16.mxu1 %v676_v4  ;;  %v146_v59 = vld [vmem:[%s1126_s1 + $0x3f8] sm:$0xff]  ;;  %v694_v61 = vpack.c.bf16 %v128_v55, %v127_v53  ;;  %v97_v63 = vld [vmem:[%s1126_s1 + $0x270] sm:$0xff]  ;;  %v15_v6 = vld [vmem:[%s1127_s0 + $0x20] sm:$0xff] }
  0x2d   :  { %647 = vmatpush3.bf16.msra.mxu0 %v646_v10  ;;  %v98_v0 = vld [vmem:[%s1126_s1 + $0x278] sm:$0xff]  ;;  %v696_v1 = vpack.c.bf16 %v146_v59, %v145_v58  ;;  %v129_v2 = vld [vmem:[%s1126_s1 + $0x370] sm:$0xff] }
  0x2e   :  { %649 = vmatprep.subr.bf16.mxu0 %v648_v12  ;;  %v130_v3 = vld [vmem:[%s1126_s1 + $0x378] sm:$0xff]  ;;  %v666_v4 = vpack.c.bf16 %v98_v0, %v97_v63  ;;  %v17_v7 = vld [vmem:[%s1127_s0 + $0x30] sm:$0xff] }
  0x2f   :  { %679 = vmatpush3.bf16.msra.mxu1 %v678_v11  ;;  %v698_v5 = vpack.c.bf16 %v130_v3, %v129_v2 }
  0x30   :  { %681 = vmatprep.subr.bf16.mxu1 %v680_v16 }
  0x31   :  { %651 = vmatpush3.bf16.msra.mxu0 %v650_v22 }
  0x32   :  { %653 = vmatprep.subr.bf16.mxu0 %v652_v26 }
  0x33   :  { %683 = vmatpush3.bf16.msra.mxu1 %v682_v25 }
  0x34   :  { %685 = vmatprep.subr.bf16.mxu1 %v684_v30 }
  0x35   :  { %655 = vmatpush3.bf16.msra.mxu0 %v654_v36 }
  0x36   :  { %657 = vmatprep.subr.bf16.mxu0 %v656_v38 }
  0x37   :  { %687 = vmatpush3.bf16.msra.mxu1 %v686_v37 }
  0x38   :  { %689 = vmatprep.subr.bf16.mxu1 %v688_v42 }
  0x39   :  { %659 = vmatpush3.bf16.msra.mxu0 %v658_v48 }
  0x3a   :  { %661 = vmatprep.subr.bf16.mxu0 %v660_v50 }
  0x3b   :  { %691 = vmatpush3.bf16.msra.mxu1 %v690_v49 }
  0x3c   :  { %693 = vmatprep.subr.bf16.mxu1 %v692_v54 }
  0x3d   :  { %663 = vmatpush3.bf16.msra.mxu0 %v662_v60 }
  0x3e   :  { %665 = vmatprep.subr.bf16.mxu0 %v664_v62 }
  0x3f   :  { %695 = vmatpush3.bf16.msra.mxu1 %v694_v61 }
  0x40   :  { %697 = vmatprep.subr.bf16.mxu1 %v696_v1 }
  0x41   :  { %667 = vmatpush3.bf16.msra.mxu0 %v666_v4 }
  0x43   :  { %699 = vmatpush3.bf16.msra.mxu1 %v698_v5 }
  0x44   :  { %352 = vmatmul.mubr.f32.vlgmr.msra.gmra.mrb[2].mxu0 %v15_v6 }
  0x46   :  { %422 = vmatmul.mubr.f32.vlgmr.msra.gmra.mrb[2].mxu1 %v17_v7 }
  0xf7   :  { %v464_v8 = vpop.f32.mrb[0].mxu0 }
  0xf8   :  { %v465_v9 = vpop.f32.mrb[1].mxu0 }
  0xf9   :  { %v499_v10 = vpop.f32.mrb[0].mxu1  ;;  %v466_v11 = vadd.f32 %v465_v9, %v464_v8 }
  0xfa   :  { %v500_v12 = vpop.f32.mrb[1].mxu1 }
  0xfb   :  { %v501_v13 = vadd.f32 %v500_v12, %v499_v10  ;;  %v214_v14 = vadd.f32 1.0, %v466_v11 }
  0xfd   :  { %v284_v15 = vadd.f32 %v501_v13, %v214_v14 }
 0x117   :  { %v534_v16 = vpop.f32.mrb[2].mxu0 }
 0x118   :  { %v535_v17 = vpop.f32.mrb[3].mxu0 }
 0x119   :  { %v569_v18 = vpop.f32.mrb[2].mxu1  ;;  %v536_v19 = vadd.f32 %v535_v17, %v534_v16 }
 0x11a   :  { %v570_v20 = vpop.f32.mrb[3].mxu1 }
 0x11b   :  { %v571_v21 = vadd.f32 %v570_v20, %v569_v18  ;;  %v354_v22 = vadd.f32 %v536_v19, %v284_v15 }
 0x11d   :  { %v424_v23 = vadd.f32 %v571_v21, %v354_v22 }
 0x11f   :  { %427 = vst [vmem:[%s1128_s2] sm:$0xff] %v424_v23 }

</bundles_post_ra>
